<compile_context>
chip_gen: v6e
topology: v6e:2x2x1
jax: 0.10.0
libtpu: 0.0.40
codegen_flags: <defaults>
</compile_context>

<pallas_src>
import math

import jax
import jax.numpy as jnp
from jax.experimental import pallas as pl
from jax.experimental.pallas import tpu as pltpu


def _tlu_kernel(x_ref, tau_ref, o_ref):
    # relu(x - tau) + tau == max(x, tau): one VPU op per vreg instead of three.
    o_ref[...] = jnp.maximum(x_ref[...], tau_ref[...])


def _floor_to(x, a):
    return (x // a) * a


def _ceil_to(x, a):
    return -(-x // a) * a


def _hw_params():
    """Per-generation block byte budget, VMEM limit, and min row-axis blocks."""
    block_bytes = 4 << 20          # ~4 MiB x-block: ~86% of HBM roofline on v5e/v6e
    vmem_limit = 32 << 20          # 2x(4+4) MiB double buffers + tau, with headroom
    min_row_blocks = 1
    try:
        info = pltpu.get_tpu_info()
        vmem_cap = getattr(info, "vmem_capacity_bytes", None)
        if vmem_cap is not None and vmem_cap <= (64 << 20):
            # v7x: 3.2 TB/s HBM but only 64 MiB VMEM and 2 TensorCores.
            block_bytes = 8 << 20      # amortize ~0.35 us/step against 3.2 TB/s
            vmem_limit = 44 << 20      # 2x(8+8) MiB double buffers + tau; < 48 MiB
            min_row_blocks = 2         # keep both TCs busy via "parallel" grid
    except Exception:
        pass                           # fall back to conservative v5e/v6e settings
    return block_bytes, vmem_limit, min_row_blocks


def _fold_factor(b, m):
    """Fold k rows into the lane axis when M is small, so the output block's
    last dim is a large multiple of 128 (lane-dense, unmasked stores)."""
    if m >= 512 or b <= 1:
        return 1
    k0 = 128 // math.gcd(m, 128)       # smallest k with (k*m) % 128 == 0
    best, k = 1, k0
    while k <= b and k * m <= 4096:
        if b % k == 0:
            best = k
        k += k0
    return best


def _choose_tiles(b, m, dtype, block_bytes, min_row_blocks):
    itemsize = jnp.dtype(dtype).itemsize
    sub = max(8, 32 // itemsize)                    # sublane packing: 8/16/32
    budget = max(block_bytes // itemsize, sub * 128)

    # Lane tile: full extent when at least `sub` rows still fit the byte
    # budget (fully contiguous HBM reads); else the largest 128-multiple.
    if m * sub <= budget:
        tm = m
    else:
        tm = max(128, _floor_to(budget // sub, 128))
    if tm >= m:
        tm = m

    # Row tile: fill the remaining budget, aligned to the sublane packing.
    tn = max(sub, _floor_to(budget // max(tm, 1), sub))
    if tn >= b:
        tn = b                                      # full extent (always legal)
        # Megacore guard (v7x): don't let the grid collapse to one block when
        # the problem is big enough to be worth sharding across 2 TCs.
        if min_row_blocks > 1 and b > sub and b * m * itemsize > (2 << 20):
            cand = _ceil_to(-(-b // min_row_blocks), sub)
            if cand < b:
                tn = cand
    return tn, tm


def tlu(x, tau):
    """TLU forward: relu(x - tau) + tau with tau broadcast over leading dims.

    x: any shape whose trailing dims equal tau.shape (as in the PyTorch module).
    """
    act_shape = tau.shape
    assert x.shape[x.ndim - len(act_shape):] == act_shape, (
        "x trailing dims must equal tau shape")

    m = 1
    for d in act_shape:
        m *= d
    b = x.size // m

    tau_flat = tau.reshape(m).astype(x.dtype)

    # Lane-density fold for small trailing dims (lane-dense out_spec).
    k = _fold_factor(b, m)
    if k > 1:
        b //= k
        tau_flat = jnp.tile(tau_flat, (k,))
        m *= k

    x2 = x.reshape(b, m)
    tau2 = tau_flat.reshape(1, m)

    block_bytes, vmem_limit, min_row_blocks = _hw_params()
    tn, tm = _choose_tiles(b, m, x.dtype, block_bytes, min_row_blocks)

    # Row axis innermost: tau's block index (0, j) is constant across
    # consecutive steps, so its block really does stay resident in VMEM.
    grid = (pl.cdiv(m, tm), pl.cdiv(b, tn))

    itemsize = jnp.dtype(x.dtype).itemsize
    cost = pl.CostEstimate(
        flops=b * m,
        transcendentals=0,
        bytes_accessed=(2 * b * m + m) * itemsize,
    )

    out2 = pl.pallas_call(
        _tlu_kernel,
        out_shape=jax.ShapeDtypeStruct((b, m), x.dtype),
        grid_spec=pl.GridSpec(
            grid=grid,
            in_specs=[
                pl.BlockSpec((tn, tm), lambda j, i: (i, j)),
                pl.BlockSpec((1, tm), lambda j, i: (0, j)),   # resident over rows
            ],
            out_specs=pl.BlockSpec((tn, tm), lambda j, i: (i, j)),
        ),
        compiler_params=pltpu.CompilerParams(
            dimension_semantics=("parallel", "parallel"),
            vmem_limit_bytes=vmem_limit,
        ),
        cost_estimate=cost,
    )(x2, tau2)
    return out2.reshape(x.shape)


if __name__ == "__main__":
    key = jax.random.PRNGKey(0)
    kx, kt, kx2, kt2 = jax.random.split(key, 4)

    # Case 1: conv-style activation, act_shape = (C, H, W).
    N, C, H, W = 2, 4, 16, 16
    x = jax.random.normal(kx, (N, C, H, W), dtype=jnp.float32)
    # nn.Parameter(torch.zeros(*act_shape)) is zeros; use a deterministic
    # non-zero tau so the broadcast/threshold path is actually exercised.
    tau = 0.1 * jax.random.normal(kt, (C, H, W), dtype=jnp.float32)
    y = tlu(x, tau)
    jax.block_until_ready(y)
    y_ref = jnp.maximum(x - tau[None], 0.0) + tau[None]
    assert y.shape == x.shape
    assert jnp.allclose(y, y_ref, atol=1e-6), "case 1 mismatch vs reference"

    # Case 2: small trailing dim (exercises the lane-density row fold).
    B2, D2 = 16, 32
    x_s = jax.random.normal(kx2, (B2, D2), dtype=jnp.float32)
    tau_s = 0.1 * jax.random.normal(kt2, (D2,), dtype=jnp.float32)
    y_s = tlu(x_s, tau_s)
    jax.block_until_ready(y_s)
    y_s_ref = jnp.maximum(x_s - tau_s[None, :], 0.0) + tau_s[None, :]
    assert y_s.shape == x_s.shape
    assert jnp.allclose(y_s, y_s_ref, atol=1e-6), "case 2 mismatch vs reference"

    print("KERNEL_OK")
</pallas_src>

<mosaic_0001>
module attributes {stable_mosaic.version = 11 : i64} {
  func.func @_tlu_kernel(%arg0: i32, %arg1: i32, %arg2: memref<2x1024xf32, #tpu.memory_space<vmem>>, %arg3: memref<1x1024xf32, #tpu.memory_space<vmem>>, %arg4: memref<2x1024xf32, #tpu.memory_space<vmem>>) attributes {dimension_semantics = [#tpu.dimension_semantics<parallel>, #tpu.dimension_semantics<parallel>], iteration_bounds = array<i64: 1, 1>, scalar_prefetch = 0 : i64, scratch_operands = 0 : i64, tpu.core_type = #tpu.core_type<tc>, window_params = [{transform_indices = @transform_0, window_bounds = array<i64: 2, 1024>}, {transform_indices = @transform_1, window_bounds = array<i64: 1, 1024>}, {transform_indices = @transform_2, window_bounds = array<i64: 2, 1024>}]} {
    %c0 = arith.constant 0 : index
    %c0_0 = arith.constant 0 : index
    %0 = vector.load %arg2[%c0, %c0_0] : memref<2x1024xf32, #tpu.memory_space<vmem>>, vector<2x1024xf32>
    %c0_1 = arith.constant 0 : index
    %c0_2 = arith.constant 0 : index
    %1 = vector.load %arg3[%c0_1, %c0_2] : memref<1x1024xf32, #tpu.memory_space<vmem>>, vector<1x1024xf32>
    %2 = vector.broadcast %1 : vector<1x1024xf32> to vector<2x1024xf32>
    %3 = arith.maximumf %0, %2 : vector<2x1024xf32>
    %c0_3 = arith.constant 0 : index
    %c0_4 = arith.constant 0 : index
    %4 = vector.load %arg4[%c0_3, %c0_4] : memref<2x1024xf32, #tpu.memory_space<vmem>>, vector<2x1024xf32>
    tpu.vector_store %arg4[%c0_3, %c0_4], %3 {strides = array<i32>} : memref<2x1024xf32, #tpu.memory_space<vmem>>, vector<2x1024xf32>,
    return
  }
  func.func @transform_0(%arg0: i32, %arg1: i32) -> (i32, i32) {
    %c0_i32 = arith.constant 0 : i32
    return %arg1, %arg0 : i32, i32
  }
  func.func @transform_1(%arg0: i32, %arg1: i32) -> (i32, i32) {
    %c0_i32 = arith.constant 0 : i32
    %c0_i32_0 = arith.constant 0 : i32
    return %c0_i32, %arg0 : i32, i32
  }
  func.func @transform_2(%arg0: i32, %arg1: i32) -> (i32, i32) {
    %c0_i32 = arith.constant 0 : i32
    return %arg1, %arg0 : i32, i32
  }
}

</mosaic_0001>

<bundles_post_ra>
// kernel: tpu_custom_call.1
= control target key start
LH: loop header
LB: loop body
LE: loop exit
PB: predicated region body
PF: predicated region fallthrough
CT: control target
= control target key end

     0   :  { %7 = vsyncpa [#allocation3], 0  ;;  %s226_s0 = inlined_call_operand.hbm [shape: f32[2,1024], index: 0, kind: input, shape index: {}]   ;;  %s227_s1 = inlined_call_operand.hbm [shape: f32[1,1024], index: 1, kind: input, shape index: {}]   ;;  %s228_s2 = inlined_call_operand.hbm [shape: f32[2,1024], index: 2, kind: output, shape index: {}]  }
   0x1   :  { %8 = vsyncpa [#allocation6], 0 }
   0x2   :  { %9 = vsyncpa [#allocation4], 0  ;;  %s198_s9 = smov [#allocation2]   ;;  %s199_s11 = smov [#allocation5]  }
   0x3   :  { %s16_s10 = sshll.u32 %s198_s9, 4  ;;  %s26_s12 = sshll.u32 %s199_s11, 4  ;;  %s17_s10 = int_to_ptr.vmem [resolvable:$true] %s16_s10  ;;  %s27_s12 = int_to_ptr.vmem [resolvable:$true] %s26_s12 }
   0x4   :  { %s140_s13 = scalar_lea.vmem %s17_s10, 256  ;;  %p145_p1 = scmp.lt.s32.totalorder %s17_s10, %s17_s10 }
   0x5   :  { %p141_p0 = scmp.ne.s32.totalorder %s17_s10, %s140_s13  ;;  %p146_p2 = scmp.lt.s32.totalorder %s140_s13, %s140_s13 }
   0x7   :  { %p147_p3 = por %p146_p2, %p145_p1 }
   0x9   :  { %p148_p4 = pnand %p147_p3, %p141_p0 }
   0xb   :  { %151 = shalt.err (!%p148_p4)
}
   0xc   :  { %19 = dma.hbm_to_vmem [thread:$0]  %s226_s0, 256, %s17_s10, [#allocation3]  }
   0xd   :  { %s160_s16 = scalar_lea.vmem %s27_s12, 128  ;;  %p165_p6 = scmp.lt.s32.totalorder %s27_s12, %s27_s12 }
   0xe   :  { %p161_p5 = scmp.ne.s32.totalorder %s27_s12, %s160_s16  ;;  %p166_p7 = scmp.lt.s32.totalorder %s160_s16, %s160_s16 }
  0x10   :  { %p167_p8 = por %p166_p7, %p165_p6 }
  0x12   :  { %p168_p9 = pnand %p167_p8, %p161_p5 }
  0x14   :  { %171 = shalt.err (!%p168_p9)
}
  0x15   :  { %29 = dma.hbm_to_vmem [thread:$0]  %s227_s1, 128, %s27_s12, [#allocation6]  }
  0x16   :  { %192 = dma.done.wait [#allocation3], 256  }
  0x17   :  { %193 = vsyncadd [#allocation3], 4294967040 }
  0x18   :  { %194 = dma.done.wait [#allocation6], 128  }
  0x19   :  { %195 = vsyncadd [#allocation6], 4294967168  ;;  %v40_v0 = vlaneseq  ;;  %v200_v1 = vmov 1983009808   ;;  %v38_v13 = vld [vmem:[#allocation5] sm:$0xff]  ;;  %v36_v29 = vld [vmem:[#allocation2] sm:$0xff] }
  0x1a   :  { %v75_v2 = vunpack.c.l.s4 %v200_v1  ;;  %v37_v33 = vld [vmem:[#allocation2 + $0x8] sm:$0xff]  ;;  %s201_s0 = smov [#allocation7]  }
  0x1b   :  { %v41_v3 = vshrl.u32 %v40_v0, 7  ;;  %s118_s1 = sshll.u32 %s201_s0, 4  ;;  %s119_s1 = int_to_ptr.vmem [resolvable:$true] %s118_s1 }
  0x1c   :  { %v76_v4 = vunpack.c.0.s8 %v75_v2  ;;  %s172_s19 = scalar_lea.vmem %s119_s1, 256  ;;  %p177_p11 = scmp.lt.s32.totalorder %s119_s1, %s119_s1 }
  0x1d   :  { %v42_v5 = vsub.s32 0, %v41_v3  ;;  %v46_v6 = vsub.s32 1, %v41_v3  ;;  %v50_v7 = vsub.s32 2, %v41_v3  ;;  %v54_v8 = vsub.s32 3, %v41_v3  ;;  %p173_p10 = scmp.ne.s32.totalorder %s119_s1, %s172_s19  ;;  %p178_p12 = scmp.lt.s32.totalorder %s172_s19, %s172_s19 }
  0x1e   :  { %v58_v9 = vsub.s32 4, %v41_v3  ;;  %v62_v10 = vsub.s32 5, %v41_v3  ;;  %v66_v11 = vsub.s32 6, %v41_v3  ;;  %v70_v12 = vsub.s32 7, %v41_v3 }
  0x1f   :  { %v79_v14 = vsub.s32 %v76_v4, %v41_v3  ;;  %v43_v15 = vrot.slane %v38_v13, %v42_v5  ;;  %v47_v16 = vrot.slane %v38_v13, %v46_v6  ;;  %v51_v17 = vrot.slane %v38_v13, %v50_v7  ;;  %p179_p13 = por %p178_p12, %p177_p11 }
  0x20   :  { %v55_v18 = vrot.slane %v38_v13, %v54_v8  ;;  %v59_v19 = vrot.slane %v38_v13, %v58_v9  ;;  %v63_v20 = vrot.slane %v38_v13, %v62_v10  ;;  %v67_v21 = vrot.slane %v38_v13, %v66_v11 }
  0x21   :  { %v71_v22 = vrot.slane %v38_v13, %v70_v12  ;;  %v72_v23 = vcombine.low %v43_v15, %v47_v16  ;;  %p180_p0 = pnand %p179_p13, %p173_p10 }
  0x22   :  { %v73_v24 = vcombine.low %v51_v17, %v55_v18  ;;  %v89_v25 = vcombine.low %v59_v19, %v63_v20 }
  0x23   :  { %v90_v26 = vcombine.low %v67_v21, %v71_v22  ;;  %v80_v27 = vrot.slane %v72_v23, %v79_v14 }
  0x24   :  { %v87_v28 = vrot.slane %v73_v24, %v79_v14  ;;  %v97_v30 = vrot.slane %v89_v25, %v79_v14 }
  0x25   :  { %v104_v31 = vrot.slane %v90_v26, %v79_v14 }
  0x26   :  { %v88_v32 = vcombine.low %v80_v27, %v87_v28 }
  0x27   :  { %v105_v34 = vcombine.low %v97_v30, %v104_v31 }
  0x28   :  { %v108_v35 = vmax.f32 %v36_v29, %v88_v32 }
  0x29   :  { %v109_v36 = vmax.f32 %v37_v33, %v105_v34 }
  0x2a   :  { %110 = vst [vmem:[#allocation7] sm:$0xff] %v108_v35 }
  0x2b   :  { %111 = vst [vmem:[#allocation7 + $0x8] sm:$0xff] %v109_v36 }
  0x2c   :  { %183 = shalt.err (!%p180_p0)
}
  0x2d   :  { %121 = dma.vmem_to_hbm [thread:$0]  %s119_s1, 256, %s228_s2, [#allocation4]  }
  0x2e   :  { %196 = dma.done.wait [#allocation4], 256  }
  0x2f   :  { %197 = vsyncadd [#allocation4], 4294967040 }
  0x30   :  { %125 = vsyncpa [#allocation3], 1 }
  0x31   :  { %126 = vsyncpa [#allocation6], 1 }
  0x32   :  { %127 = vsyncpa [#allocation4], 1 }

</bundles_post_ra>
